<compile_context>
chip_gen: v7x
topology: tpu7x:2x2x1
jax: 0.10.0
libtpu: 0.0.40
codegen_flags: <defaults>
</compile_context>

<pallas_src>
import functools

import jax
import jax.numpy as jnp
from jax.experimental import pallas as pl
from jax.experimental.pallas import tpu as pltpu


def _round_up(x, m):
    return (x + m - 1) // m * m


def _elu(x):
    # ELU(alpha=1): x if x > 0 else exp(x) - 1 (exp argument clamped so the
    # dead branch cannot overflow).  Matches PyTorch within ~1e-7 in f32.
    return jnp.where(x > 0, x, jnp.exp(jnp.minimum(x, 0.0)) - 1.0)


def _critic_kernel(first_seg, hidden_segs, value_seg,
                   obs_ref, act_ref, slab_ref, out_ref):
    """first_seg:   static (w_obs_off, w_obs_rows, w_act_off, w_act_rows, b_off).
    hidden_segs: static tuple of (w_off, w_rows, b_off) for layers >= 2.
    value_seg:   static (wv_off, bv_off).
    slab_ref:    (slab_rows, W_pad) packed params (f32 or bf16)."""
    wo_off, wo_rows, wa_off, wa_rows, b1_off = first_seg

    obs = obs_ref[...]                                   # (TILE_B, obs_pad)
    act = act_ref[...]                                   # (TILE_B, act_pad)
    w_obs = slab_ref[wo_off:wo_off + wo_rows, :]          # static, sublane-aligned views
    w_act = slab_ref[wa_off:wa_off + wa_rows, :]
    b1 = slab_ref[b1_off:b1_off + 1, :]

    # Fused first layer: the torch.cat is replaced by two additive MXU dots.
    x = _elu(jnp.dot(obs, w_obs, preferred_element_type=jnp.float32)
             + jnp.dot(act, w_act, preferred_element_type=jnp.float32)
             + b1.astype(jnp.float32))

    # Remaining hidden layers, all carried at W_pad lane width in f32.
    for (w_off, w_rows, b_off) in hidden_segs:
        w = slab_ref[w_off:w_off + w_rows, :]
        b = slab_ref[b_off:b_off + 1, :]
        x = _elu(jnp.dot(x.astype(w.dtype), w, preferred_element_type=jnp.float32)
                 + b.astype(jnp.float32))

    # Value head on VPU + XLU: sum(x * wv_row) + bv (no N=1 MXU pass).
    wv_off, bv_off = value_seg
    wv = slab_ref[wv_off:wv_off + 1, :].astype(jnp.float32)   # zero-padded lanes
    bv = slab_ref[bv_off:bv_off + 1, :].astype(jnp.float32)
    val = jnp.sum(x * wv, axis=-1, keepdims=True) + bv[:, :1]
    out_ref[...] = val.astype(out_ref.dtype)


def init_critic_params(key, n_observation, n_action, layers, init_w=0.003):
    """Deterministic init mirroring Critic.init_weights / nn.Linear defaults.

    Returns list of (w, b): weights already transposed to (in, out); biases (1, out).
    fanin_init uses v = 1/sqrt(size[0]) where size = (out, in)  -> v = 1/sqrt(out).
    """
    dims = [n_observation + n_action] + list(layers)
    params = []
    for i in range(len(dims) - 1):
        fan_in, fan_out = dims[i], dims[i + 1]
        key, kw, kb = jax.random.split(key, 3)
        v_w = 1.0 / jnp.sqrt(jnp.float32(fan_out))       # fanin_init on (out, in)
        v_b = 1.0 / jnp.sqrt(jnp.float32(fan_in))        # nn.Linear default bias init
        w = jax.random.uniform(kw, (fan_in, fan_out), jnp.float32, -v_w, v_w)
        b = jax.random.uniform(kb, (1, fan_out), jnp.float32, -v_b, v_b)
        params.append((w, b))
    fan_in = dims[-1]
    key, kw, kb = jax.random.split(key, 3)
    v_b = 1.0 / jnp.sqrt(jnp.float32(fan_in))
    wv = jax.random.uniform(kw, (fan_in, 1), jnp.float32, -init_w, init_w)
    bv = jax.random.uniform(kb, (1, 1), jnp.float32, -v_b, v_b)
    params.append((wv, bv))
    return params


def pack_critic_params(params, n_observation, n_action, dtype=jnp.float32):
    """Pack all weights/biases into one (rows, W_pad) slab + static metadata.

    Layout (every segment starts at a multiple-of-8 row; padded entries are 0):
      [w1_obs (obs_pad rows)] [w1_act (act_pad rows)] [b1 (8 rows)]
      [w_l (W_pad rows)] [b_l (8 rows)] ...  [wv_row (8 rows)] [bv_row (8 rows)]
    The first-layer weight is split into obs/act segments so the kernel can
    consume un-concatenated observation/action streams.  `dtype=jnp.bfloat16`
    enables the bf16-streaming path for v6e/v7x.
    """
    hidden = params[:-1]
    wv, bv = params[-1]

    w_pad = _round_up(max(w.shape[1] for (w, _) in hidden), 128)
    obs_pad = _round_up(n_observation, 8)
    act_pad = _round_up(n_action, 8)

    pieces = []
    off = 0

    def _add(arr):
        nonlocal off
        pieces.append(arr)
        start = off
        off += arr.shape[0]
        return start

    # First layer, split along the input dim into obs / act parts.
    w1, b1 = hidden[0]
    h1 = w1.shape[1]
    w1 = w1.astype(jnp.float32)
    w1_obs = jnp.zeros((obs_pad, w_pad), jnp.float32).at[:n_observation, :h1].set(
        w1[:n_observation])
    w1_act = jnp.zeros((act_pad, w_pad), jnp.float32).at[:n_action, :h1].set(
        w1[n_observation:])
    b1p = jnp.zeros((8, w_pad), jnp.float32).at[0:1, :h1].set(b1.astype(jnp.float32))
    wo_off = _add(w1_obs)
    wa_off = _add(w1_act)
    b1_off = _add(b1p)
    first_seg = (wo_off, obs_pad, wa_off, act_pad, b1_off)

    # Remaining hidden layers at (W_pad, W_pad).
    hidden_segs = []
    for (w, b) in hidden[1:]:
        in_l, out_l = w.shape
        wp = jnp.zeros((w_pad, w_pad), jnp.float32).at[:in_l, :out_l].set(
            w.astype(jnp.float32))
        bp = jnp.zeros((8, w_pad), jnp.float32).at[0:1, :out_l].set(
            b.astype(jnp.float32))
        w_off = _add(wp)
        b_off = _add(bp)
        hidden_segs.append((w_off, w_pad, b_off))

    # Value head packed as broadcast rows.
    h_last = wv.shape[0]
    wv_row = jnp.zeros((8, w_pad), jnp.float32).at[0, :h_last].set(
        wv[:, 0].astype(jnp.float32))
    bv_row = jnp.zeros((8, w_pad), jnp.float32).at[0, :].set(
        bv.astype(jnp.float32)[0, 0])
    wv_off = _add(wv_row)
    bv_off = _add(bv_row)

    slab = jnp.concatenate(pieces, axis=0).astype(dtype)
    meta = dict(first_seg=first_seg, hidden_segs=tuple(hidden_segs),
                value_seg=(wv_off, bv_off),
                n_obs=n_observation, n_act=n_action,
                obs_pad=obs_pad, act_pad=act_pad,
                w_pad=w_pad, slab_rows=off)
    return slab, meta


def _choose_tiling(batch, tile_b):
    """Pick (tile_b, b_pad, n_steps) for the 1-D parallel batch grid."""
    b8 = _round_up(batch, 8)
    if tile_b is None:
        # Large tiles amortize the ~0.35 us fixed per-grid-step overhead; sweep
        # 4096-8192 for very large training batches (VMEM stays a few MiB).
        tile_b = 4096
    tile_b = max(8, _round_up(min(tile_b, b8), 8))
    # Keep >= 2 grid steps whenever the batch can be split, so the "parallel"
    # batch axis can be sharded across both v7x TensorCores (single step would
    # leave one TC idle).
    if b8 >= 16 and tile_b >= b8:
        tile_b = _round_up((b8 + 1) // 2, 8)
    n_steps = -(-b8 // tile_b)
    b_pad = n_steps * tile_b
    return tile_b, b_pad, n_steps


def critic_forward(observation, action, slab, meta, *, tile_b=None):
    """observation: (B, n_obs), action: (B, n_act) -> (B, 1) float32."""
    batch = observation.shape[0]
    dtype = slab.dtype
    n_obs, n_act = meta["n_obs"], meta["n_act"]
    obs_pad, act_pad = meta["obs_pad"], meta["act_pad"]
    w_pad, slab_rows = meta["w_pad"], meta["slab_rows"]

    # No concat: obs/act stream straight into the kernel (cast to stream dtype;
    # pad feature dims to sublane multiples only when needed — zero columns hit
    # zero weight rows, so results are unchanged).
    obs = observation.astype(dtype)
    act = action.astype(dtype)
    if obs_pad != n_obs:
        obs = jnp.pad(obs, ((0, 0), (0, obs_pad - n_obs)))
    if act_pad != n_act:
        act = jnp.pad(act, ((0, 0), (0, act_pad - n_act)))

    tile_b, b_pad, n_steps = _choose_tiling(batch, tile_b)
    if b_pad != batch:
        obs = jnp.pad(obs, ((0, b_pad - batch), (0, 0)))
        act = jnp.pad(act, ((0, b_pad - batch), (0, 0)))

    # Explicit scoped-VMEM budget so large batch tiles compile under v5e's
    # 16 MiB default; clamped safely below v7x's 64 MiB physical VMEM.
    itemsize = jnp.dtype(dtype).itemsize
    vmem_est = (2 * tile_b * (obs_pad + act_pad) * itemsize   # double-buffered streams
                + 2 * tile_b * 128 * 4                        # (tile_b,1) out tiles (lane-padded)
                + 2 * slab_rows * w_pad * itemsize            # resident weight slab
                + 8 * tile_b * w_pad * 4)                     # activations + elementwise temps
    vmem_limit = int(min(max(vmem_est, 32 << 20), 48 << 20))

    kernel = functools.partial(_critic_kernel, meta["first_seg"],
                               meta["hidden_segs"], meta["value_seg"])
    out = pl.pallas_call(
        kernel,
        out_shape=jax.ShapeDtypeStruct((b_pad, 1), jnp.float32),
        grid=(n_steps,),
        in_specs=[
            pl.BlockSpec((tile_b, obs_pad), lambda i: (i, 0)),   # obs batch stream
            pl.BlockSpec((tile_b, act_pad), lambda i: (i, 0)),   # act batch stream
            pl.BlockSpec((slab_rows, w_pad), lambda i: (0, 0)),  # resident weights
        ],
        out_specs=pl.BlockSpec((tile_b, 1), lambda i: (i, 0)),
        compiler_params=pltpu.CompilerParams(
            dimension_semantics=("parallel",),
            vmem_limit_bytes=vmem_limit,
        ),
    )(obs, act, slab)
    return out[:batch]


def critic_reference(observation, action, params):
    """Pure-JAX reference (mirrors the PyTorch forward exactly)."""
    x = jnp.concatenate([observation, action], axis=1)
    for w, b in params[:-1]:
        x = _elu(x @ w + b)
    wv, bv = params[-1]
    return x @ wv + bv


if __name__ == "__main__":
    # Small shapes consistent with the module: Critic(n_observation=24,
    # n_action=8, layers=[32, 32]) applied to a batch of 8.
    n_observation, n_action = 24, 8
    layers = [32, 32]
    batch = 8

    key = jax.random.PRNGKey(0)
    k_obs, k_act, k_par, k_obs2, k_act2 = jax.random.split(key, 5)
    observation = jax.random.normal(k_obs, (batch, n_observation), jnp.float32)
    action = jax.random.normal(k_act, (batch, n_action), jnp.float32)

    params = init_critic_params(k_par, n_observation, n_action, layers)
    slab, meta = pack_critic_params(params, n_observation, n_action)

    # 1) Small inference batch, f32 streaming (single grid step).
    out = critic_forward(observation, action, slab, meta)
    out = jax.block_until_ready(out)
    ref = critic_reference(observation, action, params)
    assert out.shape == (batch, 1), out.shape
    assert jnp.allclose(out, ref, atol=1e-5, rtol=1e-5), (out, ref)

    # 2) Larger "training-like" batch exercising the multi-step parallel grid,
    #    batch padding, and the >=2-grid-steps rule (v7x megacore sharding).
    big_b = 200
    obs_big = jax.random.normal(k_obs2, (big_b, n_observation), jnp.float32)
    act_big = jax.random.normal(k_act2, (big_b, n_action), jnp.float32)
    out_big = jax.block_until_ready(critic_forward(obs_big, act_big, slab, meta))
    ref_big = critic_reference(obs_big, act_big, params)
    assert out_big.shape == (big_b, 1), out_big.shape
    assert jnp.allclose(out_big, ref_big, atol=1e-5, rtol=1e-5)

    # 3) bf16-streaming path (the v6e/v7x optimization): halves HBM traffic,
    #    MXU takes bf16 inputs with f32 accumulation.  Looser tolerance.
    slab_bf16, meta_bf16 = pack_critic_params(params, n_observation, n_action,
                                              dtype=jnp.bfloat16)
    out_bf16 = jax.block_until_ready(
        critic_forward(observation, action, slab_bf16, meta_bf16))
    assert out_bf16.shape == (batch, 1), out_bf16.shape
    assert jnp.allclose(out_bf16, ref, atol=5e-2, rtol=5e-2), (out_bf16, ref)

    print("KERNEL_OK")
</pallas_src>

<mosaic_0001>
module attributes {stable_mosaic.version = 11 : i64} {
  func.func @_critic_kernel(%arg0: i32, %arg1: memref<8x24xf32, #tpu.memory_space<vmem>>, %arg2: memref<8x8xf32, #tpu.memory_space<vmem>>, %arg3: memref<192x128xf32, #tpu.memory_space<vmem>>, %arg4: memref<8x1xf32, #tpu.memory_space<vmem>>) attributes {dimension_semantics = [#tpu.dimension_semantics<parallel>], iteration_bounds = array<i64: 1>, scalar_prefetch = 0 : i64, scratch_operands = 0 : i64, tpu.core_type = #tpu.core_type<tc>, window_params = [{transform_indices = @transform_0, window_bounds = array<i64: 8, 24>}, {transform_indices = @transform_1, window_bounds = array<i64: 8, 8>}, {pipeline_mode = #tpu.pipeline_mode<synchronous>, transform_indices = @transform_2, window_bounds = array<i64: 192, 128>}, {transform_indices = @transform_3, window_bounds = array<i64: 8, 1>}]} {
    %c0 = arith.constant 0 : index
    %c0_0 = arith.constant 0 : index
    %0 = vector.load %arg1[%c0, %c0_0] : memref<8x24xf32, #tpu.memory_space<vmem>>, vector<8x24xf32>
    %c0_1 = arith.constant 0 : index
    %c0_2 = arith.constant 0 : index
    %1 = vector.load %arg2[%c0_1, %c0_2] : memref<8x8xf32, #tpu.memory_space<vmem>>, vector<8x8xf32>
    %c0_3 = arith.constant 0 : index
    %c0_4 = arith.constant 0 : index
    %2 = vector.load %arg3[%c0_3, %c0_4] : memref<192x128xf32, #tpu.memory_space<vmem>>, vector<24x128xf32>
    %c24 = arith.constant 24 : index
    %c0_5 = arith.constant 0 : index
    %3 = vector.load %arg3[%c24, %c0_5] : memref<192x128xf32, #tpu.memory_space<vmem>>, vector<8x128xf32>
    %c32 = arith.constant 32 : index
    %c0_6 = arith.constant 0 : index
    %4 = vector.load %arg3[%c32, %c0_6] : memref<192x128xf32, #tpu.memory_space<vmem>>, vector<1x128xf32>
    %cst = arith.constant dense<0.000000e+00> : vector<8x128xf32>
    %5 = tpu.matmul %0, %2, %cst {dimension_numbers = #tpu.dot_dimension_numbers<[1], [0], [0], [1], [0, 0, 1, 1], [], []>} : vector<8x24xf32>, vector<24x128xf32>, vector<8x128xf32> -> vector<8x128xf32>
    %cst_7 = arith.constant dense<0.000000e+00> : vector<8x128xf32>
    %6 = tpu.matmul %1, %3, %cst_7 {dimension_numbers = #tpu.dot_dimension_numbers<[1], [0], [0], [1], [0, 0, 1, 1], [], []>} : vector<8x8xf32>, vector<8x128xf32>, vector<8x128xf32> -> vector<8x128xf32>
    %7 = arith.addf %5, %6 : vector<8x128xf32>
    %8 = vector.broadcast %4 : vector<1x128xf32> to vector<8x128xf32>
    %9 = arith.addf %7, %8 : vector<8x128xf32>
    %cst_8 = arith.constant 0.000000e+00 : f32
    %10 = vector.broadcast %cst_8 : f32 to vector<8x128xf32>
    %11 = arith.cmpf ogt, %9, %10 : vector<8x128xf32>
    %cst_9 = arith.constant 0.000000e+00 : f32
    %12 = vector.broadcast %cst_9 : f32 to vector<8x128xf32>
    %13 = arith.minimumf %9, %12 : vector<8x128xf32>
    %14 = math.exp %13 : vector<8x128xf32>
    %cst_10 = arith.constant 1.000000e+00 : f32
    %15 = vector.broadcast %cst_10 : f32 to vector<8x128xf32>
    %16 = arith.subf %14, %15 : vector<8x128xf32>
    %17 = arith.select %11, %9, %16 : vector<8x128xi1>, vector<8x128xf32>
    %c40 = arith.constant 40 : index
    %c0_11 = arith.constant 0 : index
    %18 = vector.load %arg3[%c40, %c0_11] : memref<192x128xf32, #tpu.memory_space<vmem>>, vector<128x128xf32>
    %c168 = arith.constant 168 : index
    %c0_12 = arith.constant 0 : index
    %19 = vector.load %arg3[%c168, %c0_12] : memref<192x128xf32, #tpu.memory_space<vmem>>, vector<1x128xf32>
    %cst_13 = arith.constant dense<0.000000e+00> : vector<8x128xf32>
    %20 = tpu.matmul %17, %18, %cst_13 {dimension_numbers = #tpu.dot_dimension_numbers<[1], [0], [0], [1], [0, 0, 1, 1], [], []>} : vector<8x128xf32>, vector<128x128xf32>, vector<8x128xf32> -> vector<8x128xf32>
    %21 = vector.broadcast %19 : vector<1x128xf32> to vector<8x128xf32>
    %22 = arith.addf %20, %21 : vector<8x128xf32>
    %cst_14 = arith.constant 0.000000e+00 : f32
    %23 = vector.broadcast %cst_14 : f32 to vector<8x128xf32>
    %24 = arith.cmpf ogt, %22, %23 : vector<8x128xf32>
    %cst_15 = arith.constant 0.000000e+00 : f32
    %25 = vector.broadcast %cst_15 : f32 to vector<8x128xf32>
    %26 = arith.minimumf %22, %25 : vector<8x128xf32>
    %27 = math.exp %26 : vector<8x128xf32>
    %cst_16 = arith.constant 1.000000e+00 : f32
    %28 = vector.broadcast %cst_16 : f32 to vector<8x128xf32>
    %29 = arith.subf %27, %28 : vector<8x128xf32>
    %30 = arith.select %24, %22, %29 : vector<8x128xi1>, vector<8x128xf32>
    %c176 = arith.constant 176 : index
    %c0_17 = arith.constant 0 : index
    %31 = vector.load %arg3[%c176, %c0_17] : memref<192x128xf32, #tpu.memory_space<vmem>>, vector<1x128xf32>
    %c184 = arith.constant 184 : index
    %c0_18 = arith.constant 0 : index
    %32 = vector.load %arg3[%c184, %c0_18] : memref<192x128xf32, #tpu.memory_space<vmem>>, vector<1x128xf32>
    %33 = vector.broadcast %31 : vector<1x128xf32> to vector<8x128xf32>
    %34 = arith.mulf %30, %33 : vector<8x128xf32>
    %cst_19 = arith.constant dense<0.000000e+00> : vector<8xf32>
    %35 = vector.multi_reduction <add>, %34, %cst_19 [1] : vector<8x128xf32> to vector<8xf32>
    %36 = vector.shape_cast %35 : vector<8xf32> to vector<8x1xf32>
    %37 = vector.extract_strided_slice %32 {offsets = [0, 0], sizes = [1, 1], strides = [1, 1]} : vector<1x128xf32> to vector<1x1xf32>
    %38 = vector.broadcast %37 : vector<1x1xf32> to vector<8x1xf32>
    %39 = arith.addf %36, %38 : vector<8x1xf32>
    %c0_20 = arith.constant 0 : index
    %c0_21 = arith.constant 0 : index
    %40 = vector.load %arg4[%c0_20, %c0_21] : memref<8x1xf32, #tpu.memory_space<vmem>>, vector<8x1xf32>
    tpu.vector_store %arg4[%c0_20, %c0_21], %39 {strides = array<i32>} : memref<8x1xf32, #tpu.memory_space<vmem>>, vector<8x1xf32>,
    return
  }
  func.func @transform_0(%arg0: i32) -> (i32, i32) {
    %c0_i32 = arith.constant 0 : i32
    %c0_i32_0 = arith.constant 0 : i32
    return %arg0, %c0_i32 : i32, i32
  }
  func.func @transform_1(%arg0: i32) -> (i32, i32) {
    %c0_i32 = arith.constant 0 : i32
    %c0_i32_0 = arith.constant 0 : i32
    return %arg0, %c0_i32 : i32, i32
  }
  func.func @transform_2(%arg0: i32) -> (i32, i32) {
    %c0_i32 = arith.constant 0 : i32
    %c0_i32_0 = arith.constant 0 : i32
    %c0_i32_1 = arith.constant 0 : i32
    return %c0_i32, %c0_i32_0 : i32, i32
  }
  func.func @transform_3(%arg0: i32) -> (i32, i32) {
    %c0_i32 = arith.constant 0 : i32
    %c0_i32_0 = arith.constant 0 : i32
    return %arg0, %c0_i32 : i32, i32
  }
}

</mosaic_0001>

<bundles_post_ra>
// kernel: tpu_custom_call.1
= control target key start
LH: loop header
LB: loop body
LE: loop exit
PB: predicated region body
PF: predicated region fallthrough
CT: control target
= control target key end

     0   :  { %8 = vsyncpa [#allocation3], 0  ;;  %s595_s0 = inlined_call_operand.hbm [shape: f32[8,24], index: 0, kind: input, shape index: {}]   ;;  %s596_s1 = inlined_call_operand.hbm [shape: f32[8,8], index: 1, kind: input, shape index: {}]   ;;  %s597_s2 = inlined_call_operand.hbm [shape: f32[192,128], index: 2, kind: input, shape index: {}]   ;;  %s598_s3 = inlined_call_operand.vmem [shape: f32[8,1], index: 3, kind: output, shape index: {}]  }
   0x1   :  { %9 = vsyncpa [#allocation5], 0  ;;  %s525_s12 = smov [#allocation4]   ;;  %s526_s14 = smov [#allocation2]  }
   0x2   :  { %s26_s13 = sshll.u32 %s525_s12, 4  ;;  %s16_s15 = sshll.u32 %s526_s14, 4  ;;  %s27_s13 = int_to_ptr.vmem [resolvable:$true] %s26_s13  ;;  %s17_s15 = int_to_ptr.vmem [resolvable:$true] %s16_s15 }
   0x3   :  { %s455_s18 = scalar_lea.hbm %s596_s1, 128 }
   0x4   :  { %p456_p0 = scmp.ne.s32.totalorder %s596_s1, %s455_s18  ;;  %p459_p1 = scmp.lt.u32.totalorder %s455_s18, %s596_s1 }
   0x6   :  { %p461_p2 = pnand %p459_p1, %p456_p0 }
   0x8   :  { %464 = shalt.err (!%p461_p2)
}
   0x9   :  { %s465_s23 = scalar_lea.vmem %s27_s13, 128  ;;  %p470_p4 = scmp.lt.s32.totalorder %s27_s13, %s27_s13 }
   0xa   :  { %p466_p3 = scmp.ne.s32.totalorder %s27_s13, %s465_s23  ;;  %p471_p5 = scmp.lt.s32.totalorder %s465_s23, %s465_s23 }
   0xc   :  { %p472_p6 = por %p471_p5, %p470_p4 }
   0xe   :  { %p473_p7 = pnand %p472_p6, %p466_p3 }
  0x10   :  { %476 = shalt.err (!%p473_p7)
}
  0x11   :  { %29 = dma.hbm_to_vmem [thread:$0]  %s596_s1, 128, %s27_s13, [#allocation5]  }
  0x12   :  { %s477_s28 = scalar_lea.hbm %s595_s0, 128 }
  0x13   :  { %p478_p8 = scmp.ne.s32.totalorder %s595_s0, %s477_s28  ;;  %p481_p9 = scmp.lt.u32.totalorder %s477_s28, %s595_s0 }
  0x15   :  { %p483_p10 = pnand %p481_p9, %p478_p8 }
  0x17   :  { %486 = shalt.err (!%p483_p10)
}
  0x18   :  { %s487_s6 = scalar_lea.vmem %s17_s15, 128  ;;  %p492_p12 = scmp.lt.s32.totalorder %s17_s15, %s17_s15 }
  0x19   :  { %p488_p11 = scmp.ne.s32.totalorder %s17_s15, %s487_s6  ;;  %p493_p13 = scmp.lt.s32.totalorder %s487_s6, %s487_s6 }
  0x1b   :  { %p494_p0 = por %p493_p13, %p492_p12 }
  0x1d   :  { %p495_p1 = pnand %p494_p0, %p488_p11 }
  0x1f   :  { %498 = shalt.err (!%p495_p1)
}
  0x20   :  { %19 = dma.hbm_to_vmem [thread:$0]  %s595_s0, 128, %s17_s15, [#allocation3]  }
  0x21   :  { %s527_s8 = smov [#allocation6]   ;;  %s499_s12 = scalar_lea.hbm %s597_s2, 3072 }
  0x22   :  { %s35_s9 = sshll.u32 %s527_s8, 4  ;;  %p500_p2 = scmp.ne.s32.totalorder %s597_s2, %s499_s12  ;;  %s36_s9 = int_to_ptr.vmem [resolvable:$true] %s35_s9 }
  0x23   :  { %p503_p3 = scmp.lt.u32.totalorder %s499_s12, %s597_s2 }
  0x25   :  { %p505_p4 = pnand %p503_p3, %p500_p2 }
  0x27   :  { %508 = shalt.err (!%p505_p4)
}
  0x28   :  { %s509_s18 = scalar_lea.vmem %s36_s9, 3072  ;;  %p514_p6 = scmp.lt.s32.totalorder %s36_s9, %s36_s9 }
  0x29   :  { %p510_p5 = scmp.ne.s32.totalorder %s36_s9, %s509_s18  ;;  %p515_p7 = scmp.lt.s32.totalorder %s509_s18, %s509_s18 }
  0x2b   :  { %p516_p8 = por %p515_p7, %p514_p6 }
  0x2d   :  { %p517_p9 = pnand %p516_p8, %p510_p5 }
  0x2f   :  { %520 = shalt.err (!%p517_p9)
}
  0x30   :  { %s528_s0 = smov 128   ;;  %s529_s15 = smov 8  }
  0x31   :  { %41 = dma.hbm_to_vmem [thread:$0]  %s597_s2, 3072, %s36_s9, [#allocation5], %s528_s0, %s528_s0, %s529_s15  }
  0x32   :  { %521 = dma.done.wait [#allocation3], 128  }
  0x33   :  { %522 = vsyncadd [#allocation3], 4294967168 }
  0x34   :  { %523 = dma.done.wait [#allocation5], 3200  }
  0x35   :  { %524 = vsyncadd [#allocation5], 4294964096  ;;  %v530_v0 = vmov 0.0   ;;  %vm531_vm0 = vmmov 0   ;;  %v532_v1 = vmov 0.0|0.0   ;;  %vm58_vm1 = vcmask 64512  }
  0x36   :  { %367 = vmatprep.subr.mxu1 %v530_v0  ;;  %369 = vmatprep.mubr.msk.f32.mxu1 %vm531_vm0, %v530_v0  ;;  %v56_v2 = vld [vmem:[#allocation6 + $0x18] sm:$0xff]  ;;  %v53_v4 = vld [vmem:[#allocation6] sm:$0xff]  ;;  %v54_v5 = vld [vmem:[#allocation6 + $0x8] sm:$0xff]  ;;  %vm132_vm2 = vcmask 195584   ;;  %vm328_vm5 = vcmask 7168  }
  0x37   :  { %419 = vmatprep.subr.bf16.mxu0 %v532_v1  ;;  %413 = vmatprep.mubr.msk.f32.mxu0 %vm531_vm0, %v530_v0  ;;  %v52_v3 = vld [vmem:[#allocation4] sm:$0xff]  ;;  %v417_v6 = vpack.c.bf16 %v54_v5, %v53_v4  ;;  %v217_v7 = vld [vmem:[#allocation6 + $0x28] sm:$0xff]  ;;  %v218_v8 = vld [vmem:[#allocation6 + $0x30] sm:$0xff] }
  0x38   :  { %368 = vmatpush3.msra.mxu1 %v56_v2  ;;  %v420_v9 = vpack.c.bf16 %v218_v8, %v217_v7  ;;  %v55_v10 = vld [vmem:[#allocation6 + $0x10] sm:$0xff]  ;;  %v219_v12 = vld [vmem:[#allocation6 + $0x38] sm:$0xff]  ;;  %v220_v13 = vld [vmem:[#allocation6 + $0x40] sm:$0xff] }
  0x39   :  { %370 = vmatmul.mubr.msk.f32.vlgmr.msra.gmra.mrb[0].mxu1 %vm58_vm1, %v52_v3  ;;  %416 = vmatprep.subr.bf16.mxu1 %v532_v1  ;;  %v51_v11 = vld [vmem:[#allocation2] sm:$0xff]  ;;  %v423_v14 = vpack.c.bf16 %v220_v13, %v219_v12  ;;  %v221_v15 = vld [vmem:[#allocation6 + $0x48] sm:$0xff]  ;;  %v223_v18 = vld [vmem:[#allocation6 + $0x58] sm:$0xff] }
  0x3a   :  { %378 = vmatprep.mubr.msk.f32.mxu1 %vm531_vm0, %v530_v0  ;;  %418 = vmatpush3.bf16.msra.mxu1 %v417_v6  ;;  %v222_v16 = vld [vmem:[#allocation6 + $0x50] sm:$0xff]  ;;  %v224_v19 = vld [vmem:[#allocation6 + $0x60] sm:$0xff]  ;;  %v225_v21 = vld [vmem:[#allocation6 + $0x68] sm:$0xff] }
  0x3b   :  { %376 = vmatprep.subr.mxu1 %v530_v0  ;;  %421 = vmatpush3.bf16.msra.mxu0 %v420_v9  ;;  %v426_v17 = vpack.c.bf16 %v222_v16, %v221_v15  ;;  %v429_v20 = vpack.c.bf16 %v224_v19, %v223_v18  ;;  %v226_v22 = vld [vmem:[#allocation6 + $0x70] sm:$0xff]  ;;  %v227_v24 = vld [vmem:[#allocation6 + $0x78] sm:$0xff]  ;;  %v228_v25 = vld [vmem:[#allocation6 + $0x80] sm:$0xff] }
  0x3c   :  { %422 = vmatprep.subr.bf16.mxu0 %v532_v1  ;;  %v432_v23 = vpack.c.bf16 %v226_v22, %v225_v21  ;;  %v229_v26 = vld [vmem:[#allocation6 + $0x88] sm:$0xff]  ;;  %v435_v27 = vpack.c.bf16 %v228_v25, %v227_v24  ;;  %v230_v28 = vld [vmem:[#allocation6 + $0x90] sm:$0xff]  ;;  %v231_v30 = vld [vmem:[#allocation6 + $0x98] sm:$0xff] }
  0x3d   :  { %v438_v29 = vpack.c.bf16 %v230_v28, %v229_v26  ;;  %v232_v31 = vld [vmem:[#allocation6 + $0xa0] sm:$0xff]  ;;  %v340_v45 = vld [vmem:[#allocation6 + $0xa8] ss:$0 sm:$0xff]  ;;  %v342_v53 = vld [vmem:[#allocation6 + $0xb0] ss:$0 sm:$0xff] }
  0x3e   :  { %377 = vmatpush3.msra.mxu1 %v55_v10  ;;  %v441_v32 = vpack.c.bf16 %v232_v31, %v231_v30  ;;  %v338_v35 = vld [vmem:[#allocation6 + $0x20] ss:$0 sm:$0xff]  ;;  %v343_v56 = vld [vmem:[#allocation6 + $0xb8] ss:$0 sm:$0xff] }
  0x3f   :  { %379 = vmatmul.mubr.msk.f32.vlgmr.msra.gmra.mrb[2].mxu1 %vm132_vm2, %v51_v11  ;;  %424 = vmatpush3.bf16.msra.mxu0 %v423_v14 }
  0x40   :  { %425 = vmatprep.subr.bf16.mxu0 %v532_v1 }
  0x43   :  { %427 = vmatpush3.bf16.msra.mxu0 %v426_v17 }
  0x44   :  { %428 = vmatprep.subr.bf16.mxu0 %v532_v1 }
  0x47   :  { %430 = vmatpush3.bf16.msra.mxu0 %v429_v20 }
  0x48   :  { %431 = vmatprep.subr.bf16.mxu0 %v532_v1 }
  0x4b   :  { %433 = vmatpush3.bf16.msra.mxu0 %v432_v23 }
  0x4c   :  { %434 = vmatprep.subr.bf16.mxu0 %v532_v1 }
  0x4f   :  { %436 = vmatpush3.bf16.msra.mxu0 %v435_v27 }
  0x50   :  { %437 = vmatprep.subr.bf16.mxu0 %v532_v1 }
  0x53   :  { %439 = vmatpush3.bf16.msra.mxu0 %v438_v29 }
  0x54   :  { %440 = vmatprep.subr.bf16.mxu0 %v532_v1 }
  0x57   :  { %442 = vmatpush3.bf16.msra.mxu0 %v441_v32 }
 0x10c   :  { %v128_v33 = vpop.f32.mrb[0].mxu1 }
 0x10d   :  { %v371_v34 = vpop.f32.mrb[1].mxu1 }
 0x112   :  { %v202_v36 = vpop.f32.mrb[2].mxu1 }
 0x113   :  { %v203_v37 = vadd.f32 %v202_v36, %v128_v33  ;;  %v380_v38 = vpop.f32.mrb[3].mxu1 }
 0x115   :  { %v210_v39 = vadd.f32 %v338_v35, %v203_v37 }
 0x117   :  { %v212_v40 = vmin.f32 %v210_v39, 0.0  ;;  %vm211_vm3 = vcmp.gt.f32.partialorder %v210_v39, 0.0 }
 0x119   :  { %v213_v41 = vmul.f32 1.442695, %v212_v40 }
 0x11b   :  { %451 = vpow2.f32 %v213_v41 }
 0x125   :  { %v452_v42 = vpop.eup %451 }
 0x126   :  { %v339_v43 = vadd.f32 -1.0, %v452_v42 }
 0x128   :  { %v216_v44 = vsel %vm211_vm3, %v210_v39, %v339_v43 }
 0x129   :  { %414 = vmatmul.mubr.f32.vlgmr.msra.gmra.mrb[0].mxu0 %v216_v44 }
 0x1fc   :  { %v304_v46 = vpop.f32.mrb[0].mxu0 }
 0x1fd   :  { %v305_v47 = vadd.f32 %v340_v45, %v304_v46  ;;  %v415_v48 = vpop.f32.mrb[1].mxu0 }
 0x1ff   :  { %v309_v49 = vmin.f32 %v305_v47, 0.0  ;;  %vm308_vm4 = vcmp.gt.f32.partialorder %v305_v47, 0.0 }
 0x201   :  { %v310_v50 = vmul.f32 1.442695, %v309_v49 }
 0x203   :  { %453 = vpow2.f32 %v310_v50 }
 0x20d   :  { %v454_v51 = vpop.eup %453 }
 0x20e   :  { %v341_v52 = vadd.f32 -1.0, %v454_v51 }
 0x210   :  { %v313_v54 = vsel %vm308_vm4, %v305_v47, %v341_v52 }
 0x211   :  { %v320_v55 = vmul.f32 %v342_v53, %v313_v54 }
 0x213   :  { %321 = vadd.xlane.f32.xlu0 %v320_v55 }
 0x2a0   :  { %v322_v57 = vpop.xlane.xlu0 %321 }
 0x2a1   :  { %v327_v58 = vadd.f32 %v343_v56, %v322_v57 }
 0x2a3   :  { %329 = vst.msk [vmem:[%s598_s3] sm:$0xff] %vm328_vm5, %v327_v58 }
 0x2a4   :  { %334 = vsyncpa [#allocation3], 1 }
 0x2a5   :  { %335 = vsyncpa [#allocation5], 1 }

</bundles_post_ra>
